<compile_context>
chip_gen: v6e
topology: v6e:2x2x1
jax: 0.10.0
libtpu: 0.0.40
codegen_flags: <defaults>
</compile_context>

<pallas_src>
import jax
import jax.numpy as jnp
from jax.experimental import pallas as pl
from jax.experimental.pallas import tpu as pltpu

H = 8  # hidden width of the module


def _round_up(n, m):
    return ((n + m - 1) // m) * m


def _pick_block_b(B, block_b):
    """Lane (batch) tile: multiple of 128, <= block_b, <= ceil(B/2) when B is
    big enough that both v7x TensorCores should get at least one block."""
    block_b = max(128, _round_up(block_b, 128))
    bt = min(block_b, _round_up(B, 128))
    if B > 256:
        bt = min(bt, _round_up(-(-B // 2), 128))
    return bt


def _vmem_limit_bytes(bt, in_itemsize, rows):
    """Explicit scoped-VMEM request: double-buffered input/output blocks plus
    the f32 intermediates, floored at 32 MiB (>= v5e's 16 MiB default) and
    capped well inside v7x's 64 MiB physical VMEM."""
    stream = 2 * rows * in_itemsize * bt + 2 * 4 * bt          # dbl-buffered in/out
    scratch = (3 * 8 + 4) * 4 * bt                             # f32 cast/h1/h2 + tails
    need = stream + scratch + (2 << 20)                        # weights + headroom
    return int(min(max(need, 32 << 20), 56 << 20))


def dqn_forward_packed(txy, params, *, block_b=32768):
    """txy: (1 + x_dim + y_dim, B) = [time; x; y] rows, any float dtype.
    Returns (1, B) f32."""
    rows, B = txy.shape
    h = H
    P = params["wpack"].shape[1]
    assert P == rows + h + 3, "weight pack does not match input row count"

    bt = _pick_block_b(B, block_b)
    grid = (pl.cdiv(B, bt),)

    # static column offsets inside the packed weight block
    c_b1 = rows
    c_w2 = rows + 1
    c_b2 = rows + 1 + h
    c_w3 = rows + 2 + h

    def kernel(sc_ref, w_ref, txy_ref, out_ref):
        W = w_ref[...]                                   # (h, P) f32, resident in VMEM
        v = txy_ref[...].astype(jnp.float32)             # (rows, bt): [t; x; y]
        t = v[0:1, :]                                    # (1, bt) time row

        # linear1 on cat(x, y): the time column of W1p is exactly zero.
        h1 = jnp.dot(W[:, :rows], v, preferred_element_type=jnp.float32) \
             + W[:, c_b1:c_b1 + 1]
        h1 = jnp.maximum(h1, 0.0)                        # relu
        # linear2 + relu
        h2 = jnp.dot(W[:, c_w2:c_w2 + h], h1, preferred_element_type=jnp.float32) \
             + W[:, c_b2:c_b2 + 1]
        h2 = jnp.maximum(h2, 0.0)
        # NOTE: with M=8 / K<=8 both dots underuse the MXU; if a bundle dump
        # shows the MXU slot binding after block enlargement, re-express them
        # as 8 sublane-broadcast VPU FMAs.

        # linear3 (N=1): broadcast-multiply + sublane (XLU) reduction.
        s = jnp.sum(W[:, c_w3:c_w3 + 1] * h2, axis=0, keepdims=True) + sc_ref[0]
        # sigmoid via the exact tanh identity -> runs on the EUP, no VPU divide
        state = 0.5 * jnp.tanh(0.5 * s) + 0.5

        # time features: cat(T - t, (T - t)^2) @ w5 / w6 expanded elementwise.
        tmt = sc_ref[7] - t
        tmt2 = tmt * tmt
        time_f1 = sc_ref[1] * tmt + sc_ref[2] * tmt2 + sc_ref[3]
        time_f2 = sc_ref[4] * tmt + sc_ref[5] * tmt2 + sc_ref[6]
        # NOTE: if a v5e bundle dump shows VALU/vst binding, this (1, bt) tail
        # can be reshaped to (8, bt//8) to use all sublanes (secondary).
        out_ref[...] = state * time_f1 + time_f2

    out = pl.pallas_call(
        kernel,
        out_shape=jax.ShapeDtypeStruct((1, B), jnp.float32),
        grid_spec=pltpu.PrefetchScalarGridSpec(
            num_scalar_prefetch=0,
            grid=grid,
            in_specs=[
                pl.BlockSpec(memory_space=pltpu.MemorySpace.SMEM),   # 8 packed scalars
                pl.BlockSpec((h, P), lambda i: (0, 0)),              # resident weight pack
                pl.BlockSpec((rows, bt), lambda i: (0, i)),          # [t; x; y] batch stream
            ],
            out_specs=pl.BlockSpec((1, bt), lambda i: (0, i)),
        ),
        compiler_params=pltpu.CompilerParams(
            dimension_semantics=("parallel",),   # shard batch blocks across TCs (v7x)
            vmem_limit_bytes=_vmem_limit_bytes(bt, txy.dtype.itemsize, rows),
        ),
    )(params["scalars"], params["wpack"], txy)
    return out


def dqn_forward(time, x, y, params, *, block_b=32768, in_dtype=jnp.bfloat16):
    """DQN.forward semantics, feature-major: time (1,B), x (x_dim,B), y (y_dim,B).

    Packs [time; x; y] into one `in_dtype` operand (single DMA stream per grid
    step).  Hot-path callers should produce the packed array directly and call
    dqn_forward_packed to skip this extra HBM pass; pass in_dtype=jnp.float32
    if full f32 time precision is required.
    """
    txy = jnp.concatenate(
        [time.astype(in_dtype), x.astype(in_dtype), y.astype(in_dtype)], axis=0)
    return dqn_forward_packed(txy, params, block_b=block_b)


def init_params(key, x_dim, y_dim, T, h=H):
    """Deterministic synthetic params (PyTorch-style uniform init), (out, in) layout."""
    ks = jax.random.split(key, 10)

    def lin(kw, kb, fan_in, fan_out):
        bound = 1.0 / jnp.sqrt(jnp.float32(fan_in))
        w = jax.random.uniform(kw, (fan_out, fan_in), jnp.float32, -bound, bound)
        b = jax.random.uniform(kb, (fan_out, 1), jnp.float32, -bound, bound)
        return w, b

    w1, b1 = lin(ks[0], ks[1], x_dim + y_dim, h)
    w2, b2 = lin(ks[2], ks[3], h, h)
    w3, b3 = lin(ks[4], ks[5], h, 1)
    w5, b5 = lin(ks[6], ks[7], 2, 1)
    w6, b6 = lin(ks[8], ks[9], 2, 1)

    # Resident VMEM weight pack: [ 0 | W1x | W1y | b1 | W2 | b2 | w3^T ]  -> (h, rows+h+3)
    w1p = jnp.concatenate([jnp.zeros((h, 1), jnp.float32), w1], axis=1)
    wpack = jnp.concatenate([w1p, b1, w2, b2, w3.T], axis=1)

    # SMEM scalars: [b3, w5_0, w5_1, b5, w6_0, w6_1, b6, T]
    scalars = jnp.stack([b3[0, 0], w5[0, 0], w5[0, 1], b5[0, 0],
                         w6[0, 0], w6[0, 1], b6[0, 0], jnp.float32(T)])

    return {
        "wpack": wpack, "scalars": scalars,
        # full copies kept only for the pure-JAX reference
        "_w1": w1, "_b1": b1, "_w2": w2, "_b2": b2, "_w3": w3, "_b3": b3,
        "_w5": w5, "_b5": b5, "_w6": w6, "_b6": b6, "_T": jnp.float32(T),
    }


def dqn_reference(time, x, y, p):
    time = time.astype(jnp.float32)
    x = x.astype(jnp.float32)
    y = y.astype(jnp.float32)
    state = jnp.concatenate([x, y], axis=0)                 # (x_dim+y_dim, B)
    state = jax.nn.relu(p["_w1"] @ state + p["_b1"])
    state = jax.nn.relu(p["_w2"] @ state + p["_b2"])
    state = jax.nn.sigmoid(p["_w3"] @ state + p["_b3"])     # (1, B)
    tmt = p["_T"] - time
    tf = jnp.concatenate([tmt, tmt ** 2], axis=0)           # (2, B)
    time_f1 = p["_w5"] @ tf + p["_b5"]
    time_f2 = p["_w6"] @ tf + p["_b6"]
    return state * time_f1 + time_f2


if __name__ == "__main__":
    x_dim, y_dim, T = 4, 3, 10.0    # rows = 1 + 4 + 3 = 8 -> full-sublane packed stream
    B = 300                         # small, but exercises multi-block grid + ragged tail

    key = jax.random.PRNGKey(0)
    kp, kt, kx, ky = jax.random.split(key, 4)

    params = init_params(kp, x_dim, y_dim, T)
    time = jax.random.uniform(kt, (1, B), jnp.float32, 0.0, T)
    x = jax.random.normal(kx, (x_dim, B), jnp.float32)
    y = jax.random.normal(ky, (y_dim, B), jnp.float32)

    # Default tile: bt=256 -> grid=(2,) with a ragged 44-lane last block.
    out = jax.block_until_ready(dqn_forward(time, x, y, params))
    # Small explicit tile: bt=128 -> grid=(3,), exercises more grid steps.
    out_small = jax.block_until_ready(dqn_forward(time, x, y, params, block_b=128))

    # Reference consumes the same bf16-rounded inputs the kernel reads, so the
    # comparison isolates the kernel's f32 math (atol accounts for matmul
    # reassociation and the EUP tanh-sigmoid at output magnitudes ~100).
    bf = lambda a: a.astype(jnp.bfloat16).astype(jnp.float32)
    ref = dqn_reference(bf(time), bf(x), bf(y), params)

    assert out.shape == (1, B) and out_small.shape == (1, B)
    assert jnp.allclose(out, ref, atol=1e-4, rtol=1e-4), \
        float(jnp.max(jnp.abs(out - ref)))
    assert jnp.allclose(out_small, ref, atol=1e-4, rtol=1e-4), \
        float(jnp.max(jnp.abs(out_small - ref)))

    print("KERNEL_OK")
</pallas_src>

<mosaic_0001>
module attributes {stable_mosaic.version = 11 : i64} {
  func.func @kernel(%arg0: i32, %arg1: memref<8xf32, #tpu.memory_space<smem>>, %arg2: memref<8x19xf32, #tpu.memory_space<vmem>>, %arg3: memref<8x256xbf16, #tpu.memory_space<vmem>>, %arg4: memref<1x256xf32, #tpu.memory_space<vmem>>) attributes {dimension_semantics = [#tpu.dimension_semantics<parallel>], iteration_bounds = array<i64: 2>, scalar_prefetch = 0 : i64, scratch_operands = 0 : i64, tpu.core_type = #tpu.core_type<tc>, window_params = [{transform_indices = @transform_0, window_bounds = array<i64: 8>}, {pipeline_mode = #tpu.pipeline_mode<synchronous>, transform_indices = @transform_1, window_bounds = array<i64: 8, 19>}, {transform_indices = @transform_2, window_bounds = array<i64: 8, 256>}, {transform_indices = @transform_3, window_bounds = array<i64: 1, 256>}]} {
    %c0 = arith.constant 0 : index
    %c0_0 = arith.constant 0 : index
    %0 = vector.load %arg2[%c0, %c0_0] : memref<8x19xf32, #tpu.memory_space<vmem>>, vector<8x19xf32>
    %c0_1 = arith.constant 0 : index
    %c0_2 = arith.constant 0 : index
    %1 = vector.load %arg3[%c0_1, %c0_2] : memref<8x256xbf16, #tpu.memory_space<vmem>>, vector<8x256xbf16>
    %2 = arith.extf %1 : vector<8x256xbf16> to vector<8x256xf32>
    %3 = vector.extract_strided_slice %2 {offsets = [0, 0], sizes = [1, 256], strides = [1, 1]} : vector<8x256xf32> to vector<1x256xf32>
    %4 = vector.extract_strided_slice %0 {offsets = [0, 0], sizes = [8, 8], strides = [1, 1]} : vector<8x19xf32> to vector<8x8xf32>
    %cst = arith.constant dense<0.000000e+00> : vector<8x256xf32>
    %5 = tpu.matmul %4, %2, %cst {dimension_numbers = #tpu.dot_dimension_numbers<[1], [0], [0], [1], [0, 0, 1, 1], [], []>} : vector<8x8xf32>, vector<8x256xf32>, vector<8x256xf32> -> vector<8x256xf32>
    %6 = vector.extract_strided_slice %0 {offsets = [0, 8], sizes = [8, 1], strides = [1, 1]} : vector<8x19xf32> to vector<8x1xf32>
    %7 = vector.broadcast %6 : vector<8x1xf32> to vector<8x256xf32>
    %8 = arith.addf %5, %7 : vector<8x256xf32>
    %cst_3 = arith.constant 0.000000e+00 : f32
    %9 = vector.broadcast %cst_3 : f32 to vector<8x256xf32>
    %10 = arith.maximumf %8, %9 : vector<8x256xf32>
    %11 = vector.extract_strided_slice %0 {offsets = [0, 9], sizes = [8, 8], strides = [1, 1]} : vector<8x19xf32> to vector<8x8xf32>
    %cst_4 = arith.constant dense<0.000000e+00> : vector<8x256xf32>
    %12 = tpu.matmul %11, %10, %cst_4 {dimension_numbers = #tpu.dot_dimension_numbers<[1], [0], [0], [1], [0, 0, 1, 1], [], []>} : vector<8x8xf32>, vector<8x256xf32>, vector<8x256xf32> -> vector<8x256xf32>
    %13 = vector.extract_strided_slice %0 {offsets = [0, 17], sizes = [8, 1], strides = [1, 1]} : vector<8x19xf32> to vector<8x1xf32>
    %14 = vector.broadcast %13 : vector<8x1xf32> to vector<8x256xf32>
    %15 = arith.addf %12, %14 : vector<8x256xf32>
    %cst_5 = arith.constant 0.000000e+00 : f32
    %16 = vector.broadcast %cst_5 : f32 to vector<8x256xf32>
    %17 = arith.maximumf %15, %16 : vector<8x256xf32>
    %18 = vector.extract_strided_slice %0 {offsets = [0, 18], sizes = [8, 1], strides = [1, 1]} : vector<8x19xf32> to vector<8x1xf32>
    %19 = vector.broadcast %18 : vector<8x1xf32> to vector<8x256xf32>
    %20 = arith.mulf %19, %17 : vector<8x256xf32>
    %cst_6 = arith.constant dense<0.000000e+00> : vector<256xf32>
    %21 = vector.multi_reduction <add>, %20, %cst_6 [0] : vector<8x256xf32> to vector<256xf32>
    %22 = vector.shape_cast %21 : vector<256xf32> to vector<1x256xf32>
    %c0_7 = arith.constant 0 : index
    %23 = memref.load %arg1[%c0_7] : memref<8xf32, #tpu.memory_space<smem>>
    %24 = vector.broadcast %23 : f32 to vector<1x256xf32>
    %25 = arith.addf %22, %24 : vector<1x256xf32>
    %cst_8 = arith.constant 5.000000e-01 : f32
    %26 = vector.broadcast %cst_8 : f32 to vector<1x256xf32>
    %27 = arith.mulf %26, %25 : vector<1x256xf32>
    %28 = math.tanh %27 : vector<1x256xf32>
    %cst_9 = arith.constant 5.000000e-01 : f32
    %29 = vector.broadcast %cst_9 : f32 to vector<1x256xf32>
    %30 = arith.mulf %29, %28 : vector<1x256xf32>
    %cst_10 = arith.constant 5.000000e-01 : f32
    %31 = vector.broadcast %cst_10 : f32 to vector<1x256xf32>
    %32 = arith.addf %30, %31 : vector<1x256xf32>
    %c7 = arith.constant 7 : index
    %33 = memref.load %arg1[%c7] : memref<8xf32, #tpu.memory_space<smem>>
    %34 = vector.broadcast %33 : f32 to vector<1x256xf32>
    %35 = arith.subf %34, %3 : vector<1x256xf32>
    %36 = arith.mulf %35, %35 : vector<1x256xf32>
    %c1 = arith.constant 1 : index
    %37 = memref.load %arg1[%c1] : memref<8xf32, #tpu.memory_space<smem>>
    %38 = vector.broadcast %37 : f32 to vector<1x256xf32>
    %39 = arith.mulf %38, %35 : vector<1x256xf32>
    %c2 = arith.constant 2 : index
    %40 = memref.load %arg1[%c2] : memref<8xf32, #tpu.memory_space<smem>>
    %41 = vector.broadcast %40 : f32 to vector<1x256xf32>
    %42 = arith.mulf %41, %36 : vector<1x256xf32>
    %43 = arith.addf %39, %42 : vector<1x256xf32>
    %c3 = arith.constant 3 : index
    %44 = memref.load %arg1[%c3] : memref<8xf32, #tpu.memory_space<smem>>
    %45 = vector.broadcast %44 : f32 to vector<1x256xf32>
    %46 = arith.addf %43, %45 : vector<1x256xf32>
    %c4 = arith.constant 4 : index
    %47 = memref.load %arg1[%c4] : memref<8xf32, #tpu.memory_space<smem>>
    %48 = vector.broadcast %47 : f32 to vector<1x256xf32>
    %49 = arith.mulf %48, %35 : vector<1x256xf32>
    %c5 = arith.constant 5 : index
    %50 = memref.load %arg1[%c5] : memref<8xf32, #tpu.memory_space<smem>>
    %51 = vector.broadcast %50 : f32 to vector<1x256xf32>
    %52 = arith.mulf %51, %36 : vector<1x256xf32>
    %53 = arith.addf %49, %52 : vector<1x256xf32>
    %c6 = arith.constant 6 : index
    %54 = memref.load %arg1[%c6] : memref<8xf32, #tpu.memory_space<smem>>
    %55 = vector.broadcast %54 : f32 to vector<1x256xf32>
    %56 = arith.addf %53, %55 : vector<1x256xf32>
    %57 = arith.mulf %32, %46 : vector<1x256xf32>
    %58 = arith.addf %57, %56 : vector<1x256xf32>
    %c0_11 = arith.constant 0 : index
    %c0_12 = arith.constant 0 : index
    %59 = vector.load %arg4[%c0_11, %c0_12] : memref<1x256xf32, #tpu.memory_space<vmem>>, vector<1x256xf32>
    tpu.vector_store %arg4[%c0_11, %c0_12], %58 {strides = array<i32>} : memref<1x256xf32, #tpu.memory_space<vmem>>, vector<1x256xf32>,
    return
  }
  func.func @transform_0(%arg0: i32) -> i32 {
    %c0_i32 = arith.constant 0 : i32
    %c0_i32_0 = arith.constant 0 : i32
    return %c0_i32 : i32
  }
  func.func @transform_1(%arg0: i32) -> (i32, i32) {
    %c0_i32 = arith.constant 0 : i32
    %c0_i32_0 = arith.constant 0 : i32
    %c0_i32_1 = arith.constant 0 : i32
    return %c0_i32, %c0_i32_0 : i32, i32
  }
  func.func @transform_2(%arg0: i32) -> (i32, i32) {
    %c0_i32 = arith.constant 0 : i32
    %c0_i32_0 = arith.constant 0 : i32
    return %c0_i32, %arg0 : i32, i32
  }
  func.func @transform_3(%arg0: i32) -> (i32, i32) {
    %c0_i32 = arith.constant 0 : i32
    %c0_i32_0 = arith.constant 0 : i32
    return %c0_i32, %arg0 : i32, i32
  }
}

</mosaic_0001>

<bundles_post_ra>
// kernel: tpu_custom_call.1
= control target key start
LH: loop header
LB: loop body
LE: loop exit
PB: predicated region body
PF: predicated region fallthrough
CT: control target
= control target key end

     0   :  { %8 = vsyncpa [#allocation5], 0  ;;  %s1076_s0 = inlined_call_operand.hbm [shape: f32[8], index: 0, kind: input, shape index: {}]   ;;  %s1077_s1 = inlined_call_operand.hbm [shape: f32[8,19], index: 1, kind: input, shape index: {}]   ;;  %s1078_s2 = inlined_call_operand.hbm [shape: bf16[8,300], index: 2, kind: input, shape index: {}]   ;;  %s1079_s3 = inlined_call_operand.hbm [shape: f32[1,300], index: 3, kind: output, shape index: {}]  }
   0x1   :  { %9 = vsyncpa [#allocation3], 0 }
   0x2   :  { %10 = vsyncpa [#allocation8], 0 }
   0x3   :  { %12 = vsyncpa [#allocation8 + $0x1], 0 }
   0x4   :  { %13 = vsyncpa [#allocation4], 0 }
   0x5   :  { %15 = vsyncpa [#allocation4 + $0x1], 0  ;;  %s875_s12 = smov 0   ;;  %s877_s13 = smov 0  }
   0x6   :  { %s879_s14 = smov 0   ;;  %s881_s15 = smov 0  }
   0x7 LB: > { %s896_s16 = sadd.s32 4294967295, %s843_s15   ;;  %s599_s17 = sadd.s32 4294967294, %s843_s15   ;;  %s843_s15 = sphi %s881_s15, %s1100_s15   ;;  %s839_s14 = sphi %s879_s14, %s1099_s14   ;;  %s835_s13 = sphi %s877_s13, %s1098_s13   ;;  %s831_s12 = sphi %s875_s12, %s1097_s12  }
   0x8   : > { %s900_s18 = sadd.s32 1, %s843_s15   ;;  %s70_s19 = sadd.s32 1, %s839_s14 }
   0x9   : > { %s67_s20 = ssub.s32 %s843_s15, %s900_s18  ;;  %p77_p0 = scmp.ne.s32.totalorder %s839_s14, %s835_s13 }
   0xa   : > { %p68_p1 = scmp.eq.s32.totalorder %s67_s20, 0  ;;  %p78_p2 = scmp.eq.s32.totalorder %s843_s15, 0 }
   0xb   : > { %p83_p3 = scmp.ne.s32.totalorder %s835_s13, %s831_s12  ;;  %p1080_p4 = scmp.eq.s32.totalorder %s896_s16, 0 }
   0xc   : > { %s912_s21 = scalar_select %p68_p1, %s839_s14, %s70_s19  }
   0xd   : > { %p914_p5 = por %p78_p2, %p77_p0  ;;  %p920_p6 = por %p1080_p4, %p83_p3 }
   0xe   : > { %p107_p7 = scmp.eq.s32.totalorder %s896_s16, 1  ;;  %p113_p8 = scmp.eq.s32.totalorder %s599_s17, 1 }
   0xf   : > { %s1084_s23 = scalar_select %p920_p6, 1, 0 }
  0x10   : > { %p600_p9 = scmp.ge.s32.totalorder %s843_s15, 1  ;;  %p120_p10 = scmp.lt.s32.totalorder %s843_s15, 3 }
  0x11   : > { %p927_p11 = por %p107_p7, %p77_p0  ;;  %p931_p12 = por %p113_p8, %p83_p3 }
  0x12   : > { %p935_p13 = pnand %p600_p9, %p120_p10  ;;  %s845_s27 = smov [#allocation6]  }
  0x13   : > { %s1085_s24 = scalar_select %p927_p11, 1, 0 }
  0x14   : > { %s1086_s25 = scalar_select %p931_p12, 1, 0 }
  0x15   : > { %p644_p1 = pneg %p935_p13  ;;  %s142_s28 = sshll.u32 %s845_s27, 4  ;;  %s143_s28 = int_to_ptr.vmem [resolvable:$true] %s142_s28 }
  0x16   : > { %s846_s30 = smov [#allocation2]   ;;  %s730_s6 = scalar_lea.vmem %s143_s28, 128 }
  0x17   : > { %p943_p2 = pnand %p644_p1, %p1080_p4  ;;  %p731_p3 = scmp.ne.s32.totalorder %s143_s28, %s730_s6 }
  0x18   : > { %p738_p9 = scmp.lt.s32.totalorder %s143_s28, %s143_s28  ;;  %p739_p10 = scmp.lt.s32.totalorder %s730_s6, %s730_s6 }
  0x19   : > { %647 = dma.hbm_to_smem (!%p943_p2), %s1076_s0, 16, %s846_s30, [#allocation5]  }
  0x1a   : > { %p721_p0 = pneg %p943_p2  ;;  %p740_p1 = por %p739_p10, %p738_p9 }
  0x1c   : > { %p733_p7 = pnand %p731_p3, %p721_p0 }
  0x1e   : > { %p734_p8 = pneg %p733_p7 }
  0x20   : > { %p741_p4 = pnand %p740_p1, %p734_p8 }
  0x22   : > { %744 = shalt.err (!%p741_p4)
}
  0x23   : > { %650 = dma.hbm_to_vmem [thread:$0]  (!%p943_p2), %s1077_s1, 128, %s143_s28, [#allocation3]  }
  0x24   : > { %p1081_p12 = scmp.ge.s32.totalorder %s843_s15, 2 }
  0x26   : > { %149 = sbr.rel (%p1081_p12) target bundleno = 74 (0x4a), region = 24 }
  0x2b   : > { %152 = sbr.rel (!%p914_p5) target bundleno = 74 (0x4a), region = 28  ;;  %s153_s9 = sand.u32 (%p914_p5), 1, %s839_s14  }
  0x2c   : > { %s605_s10 = sshll.u32 (%p914_p5), %s843_s15, 1  ;;  %s604_s11 = sshll.u32 (%p914_p5), %s153_s9, 3 }
  0x2d   : > { %s159_s17 = ssub.s32 (%p914_p5), 3, %s605_s10  ;;  %s969_s27 = scalar_lea.sflag (%p914_p5), [#allocation8], %s153_s9 }
  0x2e   : > { %p160_p4 = scmp.lt.s32.totalorder (%p914_p5), %s159_s17, 2  ;;  %s157_s28 = scalar_lea.vmem (%p914_p5), [#allocation7], %s604_s11 }
  0x30   : > { %s1102_s17 = smov (!%p160_p4, %s159_s17), 2 }
  0x31   : > { %s966_s19 = sshll.u32 %s1102_s17, 6 }
  0x32   : > { %s164_s20 = ssub.s32 128, %s966_s19 }
  0x33   : > { %165 = vsyncadd %s969_s27, %s164_s20  ;;  %p607_p5 = scmp.ne.s32.totalorder %s966_s19, 0  ;;  %s632_s22 = sshll.u32 %s843_s15, 7 }
  0x34   : > { %s168_s4 = scalar_lea.hbm %s1078_s2, %s632_s22  ;;  %s171_s5 = sshll.u32 %s157_s28, 4  ;;  %s172_s5 = int_to_ptr.vmem [resolvable:$true] %s171_s5 }
  0x35   : > { %s745_s6 = scalar_lea.hbm %s168_s4, %s966_s19  ;;  %s749_s9 = scalar_lea.hbm %s1078_s2, 192 }
  0x36   : > { %p746_p2 = scmp.ne.s32.totalorder %s168_s4, %s745_s6  ;;  %p750_p7 = scmp.lt.s32.totalorder %s168_s4, %s1078_s2 }
  0x37   : > { %p751_p8 = scmp.lt.s32.totalorder %s749_s9, %s745_s6 }
  0x38   : > { %p747_p0 = pnand %p746_p2, %p607_p5 }
  0x39   : > { %p752_p9 = por %p751_p8, %p750_p7 }
  0x3a   : > { %p748_p3 = pneg %p747_p0 }
  0x3c   : > { %p753_p10 = pnand %p752_p9, %p748_p3 }
  0x3e   : > { %756 = shalt.err (!%p753_p10)
}
  0x3f   : > { %s757_s17 = scalar_lea.vmem %s172_s5, %s966_s19  ;;  %s847_s20 = smov [#allocation7]  }
  0x40   : > { %p758_p1 = scmp.ne.s32.totalorder %s172_s5, %s757_s17  ;;  %s761_s28 = sshll.u32 %s847_s20, 4  ;;  %s762_s28 = int_to_ptr.vmem [resolvable:$false] %s761_s28 }
  0x41   : > { %s763_s22 = scalar_lea.vmem %s762_s28, 256  ;;  %p764_p0 = scmp.lt.s32.totalorder %s172_s5, %s762_s28 }
  0x42   : > { %p759_p4 = pnand %p758_p1, %p607_p5  ;;  %p765_p12 = scmp.lt.s32.totalorder %s763_s22, %s757_s17 }
  0x44   : > { %p760_p2 = pneg %p759_p4  ;;  %p766_p11 = por %p765_p12, %p764_p0 }
  0x46   : > { %p767_p6 = pnand %p766_p11, %p760_p2 }
  0x48   : > { %770 = shalt.err (!%p767_p6)
}
  0x49   : > { %174 = dma.hbm_to_vmem [thread:$0]  (%p607_p5), %s168_s4, %s966_s19, %s172_s5, %s969_s27  }
  0x4a PF: > { %180 = sbr.rel (%p935_p13) target bundleno = 567 (0x237), region = 32  ;;  %p1089_p3 = scmp.eq.s32.totalorder (!%p935_p13), %s896_s16, 0 }
  0x4f   : > { %814 = dma.done.wait (%p1089_p3), [#allocation5], 16   ;;  %p1090_p7 = pmov %p1089_p3 }
  0x50   : > { %p1091_p12 = pmov %p1089_p3 }
  0x51   : > { %816 = vsyncadd (%p1090_p7), [#allocation5], 4294967280 }
  0x52   : > { %818 = dma.done.wait (%p1091_p12), [#allocation3], 128   ;;  %p1092_p6 = pmov %p1089_p3 }
  0x53   : > { %s1004_s19 = sand.u32 1, %s835_s13   ;;  %p1093_p11 = scmp.ne.s32.totalorder %s1084_s23, 0 }
  0x54   : > { %820 = vsyncadd (%p1092_p6), [#allocation3], 4294967168  ;;  %s614_s26 = sshll.u32 %s1004_s19, 3  ;;  %s191_s27 = scalar_lea.sflag [#allocation8], %s1004_s19 }
  0x55   : > { %s194_s29 = scalar_lea.vmem [#allocation7], %s614_s26 }
  0x56   : > { %822 = dma.done.wait (%p1093_p11), %s191_s27, 128  }
  0x57   : > { %824 = vsyncadd (%p1093_p11), %s191_s27, 4294967168 }
  0x58   : > { %199 = sfence }
  0x59   : > { %v1012_v0 = vld [vmem:[%s194_s29] sm:$0xff]  ;;  %v848_v3 = vmov 0.0   ;;  %v228_v4 = vld [vmem:[#allocation6] sm:$0xff]  ;;  %vm237_vm0 = vcmask 64512   ;;  %v849_v5 = vmov 8   ;;  %s850_s23 = smov 119  }
  0x5a   : > { %v231_v1 = vunpack.c.h.bf16 %v1012_v0  ;;  %v230_v2 = vunpack.c.l.bf16 %v1012_v0  ;;  %304 = vmatprep.mubr.f32.mxu0 %v848_v3  ;;  %385 = vmatprep.mubr.f32.mxu1 %v848_v3  ;;  %v851_v6 = vmov 17   ;;  %v852_v7 = vmov 18   ;;  %s412_s30 = sld [smem:[#allocation2]]  ;;  %s615_s11 = sshll.u32 %s1004_s19, 1 }
  0x5b   : > { %700 = vset.pattern.permute.xlu0 %v849_v5  ;;  %701 = vset.pattern.permute.xlu1 %v851_v6  ;;  %s618_s4 = sld [smem:[#allocation2 + $0x7]]  ;;  %v468_v6 = vlaneseq  ;;  %s217_s17 = scalar_lea.vmem [#allocation9], %s615_s11 }
  0x5c   : > { %270 = vmatprep.subr.mxu0 %v231_v1  ;;  %234 = vperm.xlu0 %700, %v228_v4   ;;  %s619_s5 = sld [smem:[#allocation2 + $0x1]]  ;;  %s486_s20 = scalar_lea.sflag [#allocation4], %s1004_s19 }
  0x5d   : > { %271 = vmatpush1.msra.mxu0 %v230_v2  ;;  %314 = vperm.xlu1 %701, %v228_v4   ;;  %s620_s6 = sld [smem:[#allocation2 + $0x2]]  ;;  %vm482_vm1 = vcmp.lt.s32.totalorder %v468_v6, 256  ;;  %p1094_p13 = scmp.ne.s32.totalorder %s1085_s24, 0 }
  0x5e   : > { %616 = vmatmul.mubr.msk.f32.vlgmr.msra.gmra.mxu0 %vm237_vm0, %v228_v4  ;;  %s622_s7 = sld [smem:[#allocation2 + $0x4]]  ;;  %s626_s28 = sshll.u32 (%p1094_p13), %s896_s16, 1 }
  0x5f   : > { %s623_s8 = sld [smem:[#allocation2 + $0x5]]  ;;  %s494_s22 = ssub.s32 (%p1094_p13), 3, %s626_s28 }
  0x60   : > { %317 = vrot.lane.b32.xlu0 %v228_v4, %s850_s23  ;;  %v413_v35 = vstv %s412_s30  ;;  %s621_s9 = sld [smem:[#allocation2 + $0x3]]  ;;  %p495_p5 = scmp.lt.s32.totalorder (%p1094_p13), %s494_s22, 2 }
  0x61   : > { %703 = vset.pattern.permute.xlu0 %v852_v7  ;;  %702 = vset.pattern.permute.xlu1 %v852_v7  ;;  %v425_v38 = vstv %s618_s4  ;;  %s624_s10 = sld [smem:[#allocation2 + $0x6]] }
  0x62   : > { %395 = vperm.xlu1 %702, %v228_v4   ;;  %v426_v41 = vsub.f32 %v425_v38, %v230_v2  ;;  %v427_v44 = vsub.f32 %v425_v38, %v231_v1  ;;  %v431_v47 = vstv %s619_s5  ;;  %v853_v4 = vmov 1966171168  }
  0x63   : > { %v435_v48 = vstv %s620_s6  ;;  %v466_v5 = vunpack.c.l.s4 %v853_v4 }
  0x64   : > { %v428_v46 = vmul.f32 %v426_v41, %v426_v41  ;;  %v429_v49 = vmul.f32 %v427_v44, %v427_v44  ;;  %v445_v50 = vstv %s622_s7  ;;  %v432_v52 = vmul.f32 %v431_v47, %v426_v41 }
  0x65   : > { %v449_v51 = vstv %s623_s8  ;;  %v433_v54 = vmul.f32 %v431_v47, %v427_v44  ;;  %v447_v56 = vmul.f32 %v445_v50, %v427_v44  ;;  %v446_v58 = vmul.f32 %v445_v50, %v426_v41 }
  0x66   : > { %v436_v53 = vmul.f32 %v435_v48, %v428_v46  ;;  %v437_v55 = vmul.f32 %v435_v48, %v429_v49  ;;  %v451_v57 = vmul.f32 %v449_v51, %v429_v49  ;;  %v450_v59 = vmul.f32 %v449_v51, %v428_v46 }
  0x67   : > { %v441_v61 = vstv %s621_s9  ;;  %v455_v1 = vstv %s624_s10 }
  0x68   : > { %v438_v60 = vadd.f32 %v436_v53, %v432_v52  ;;  %v439_v62 = vadd.f32 %v437_v55, %v433_v54  ;;  %v453_v0 = vadd.f32 %v451_v57, %v447_v56  ;;  %v452_v2 = vadd.f32 %v450_v59, %v446_v58 }
  0x6a   : > { %v442_v3 = vadd.f32 %v441_v61, %v438_v60 }
  0xd7   : > { %v235_v8 = vpop.permute.xlu0 %234 }
  0xd8   : > { %v315_v16 = vpop.permute.xlu1 %314 }
  0xdb   : > { %v318_v15 = vpop.permute.xlu0 %317 }
  0xdd   : > { %v396_v20 = vpop.permute.xlu1 %395 }
 0x11e   : > { %v306_v9 = vpop.f32.mrf.mxu0 }
 0x11f   : > { %v307_v10 = vadd.f32 %v306_v9, %v235_v8  ;;  %v443_v9 = vadd.f32 %v441_v61, %v439_v62 }
 0x120   : > { %v308_v11 = vpop.f32.mrf.mxu0 }
 0x121   : > { %v309_v12 = vadd.f32 %v308_v11, %v235_v8  ;;  %v311_v14 = vmax.f32 %v307_v10, 0.0 }
 0x123   : > { %v312_v13 = vmax.f32 %v309_v12, 0.0  ;;  %v457_v12 = vadd.f32 %v455_v1, %v453_v0 }
 0x125   : > { %351 = vmatprep.subr.mxu1 %v312_v13  ;;  %v456_v13 = vadd.f32 %v455_v1, %v452_v2 }
 0x126   : > { %352 = vmatpush1.msra.mxu1 %v311_v14  ;;  %v467_v14 = vunpack.c.0.s8 %v466_v5 }
 0x127   : > { %617 = vmatmul.mubr.msk.f32.vlgmr.msra.gmra.mxu1 %vm237_vm0, %v318_v15  ;;  %v469_v15 = vshrl.u32 %v468_v6, 7 }
 0x1e7   : > { %v387_v17 = vpop.f32.mrf.mxu1 }
 0x1e8   : > { %v388_v18 = vadd.f32 %v387_v17, %v315_v16 }
 0x1e9   : > { %v389_v19 = vpop.f32.mrf.mxu1 }
 0x1ea   : > { %v392_v21 = vmax.f32 %v388_v18, 0.0  ;;  %v390_v22 = vadd.f32 %v389_v19, %v315_v16  ;;  %v470_v19 = vsub.s32 %v467_v14, %v469_v15 }
 0x1ec   : > { %v393_v23 = vmax.f32 %v390_v22, 0.0  ;;  %v398_v24 = vmul.f32 %v396_v20, %v392_v21 }
 0x1ee   : > { %v399_v25 = vmul.f32 %v396_v20, %v393_v23  ;;  %v400_v26 = vrot.slane %v398_v24, 4 }
 0x1f0   : > { %v401_v27 = vadd.f32 %v400_v26, %v398_v24  ;;  %v406_v28 = vrot.slane %v399_v25, 4 }
 0x1f2   : > { %v402_v29 = vrot.slane %v401_v27, 2  ;;  %v407_v30 = vadd.f32 %v406_v28, %v399_v25 }
 0x1f4   : > { %v403_v31 = vadd.f32 %v402_v29, %v401_v27  ;;  %v408_v32 = vrot.slane %v407_v30, 2 }
 0x1f6   : > { %v404_v33 = vrot.slane %v403_v31, 1  ;;  %v409_v34 = vadd.f32 %v408_v32, %v407_v30 }
 0x1f8   : > { %v405_v36 = vadd.f32 %v404_v33, %v403_v31  ;;  %v410_v37 = vrot.slane %v409_v34, 1 }
 0x1fa   : > { %v411_v39 = vadd.f32 %v410_v37, %v409_v34  ;;  %v414_v40 = vadd.f32 %v413_v35, %v405_v36 }
 0x1fc   : > { %v415_v42 = vadd.f32 %v413_v35, %v411_v39  ;;  %v416_v43 = vmul.f32 0.5, %v414_v40 }
 0x1fe   : > { %v417_v45 = vmul.f32 0.5, %v415_v42  ;;  %704 = vtanh.f32 %v416_v43 }
 0x200   : > { %706 = vtanh.f32 %v417_v45 }
 0x20b   : > { %v705_v63 = vpop.eup %704 }
 0x20c   : > { %v420_v7 = vmul.f32 0.5, %v705_v63 }
 0x20d   : > { %v707_v8 = vpop.eup %706 }
 0x20e   : > { %v421_v10 = vmul.f32 0.5, %v707_v8  ;;  %v422_v11 = vadd.f32 0.5, %v420_v7 }
 0x210   : > { %v423_v16 = vadd.f32 0.5, %v421_v10  ;;  %v458_v17 = vmul.f32 %v442_v3, %v422_v11 }
 0x212   : > { %v459_v18 = vmul.f32 %v443_v9, %v423_v16  ;;  %v460_v20 = vadd.f32 %v458_v17, %v456_v13 }
 0x214   : > { %v461_v21 = vadd.f32 %v459_v18, %v457_v12 }
 0x216   : > { %v464_v22 = vcombine.low %v460_v20, %v461_v21 }
 0x218   : > { %v471_v23 = vrot.slane %v464_v22, %v470_v19  ;;  %492 = sbr.rel (!%p1094_p13) target bundleno = 567 (0x237), region = 48 }
 0x21a   : > { %v478_v24 = vrot.slane %v471_v23, %v470_v19 }
 0x21c   : > { %484 = vst.msk [vmem:[%s217_s17] sm:$0x3] %vm482_vm1, %v478_v24 }
 0x21d   : > { %s1104_s22 = smov (!%p495_p5, %s494_s22), 2 }
 0x21e   : > { %s1031_s26 = sshll.u32 %s1104_s22, 4 }
 0x21f   : > { %s499_s27 = ssub.s32 32, %s1031_s26 }
 0x220   : > { %500 = vsyncadd %s486_s20, %s499_s27  ;;  %p628_p8 = scmp.ne.s32.totalorder %s1031_s26, 0  ;;  %s633_s29 = sshll.u32 %s896_s16, 5 }
 0x221   : > { %s503_s30 = scalar_lea.hbm %s1079_s3, %s633_s29  ;;  %s505_s4 = sshll.u32 %s217_s17, 4  ;;  %s506_s4 = int_to_ptr.vmem [resolvable:$true] %s505_s4 }
 0x222   : > { %s771_s5 = scalar_lea.vmem %s506_s4, %s1031_s26  ;;  %s854_s6 = smov [#allocation9]  }
 0x223   : > { %p772_p9 = scmp.ne.s32.totalorder %s506_s4, %s771_s5  ;;  %s775_s7 = sshll.u32 %s854_s6, 4  ;;  %s776_s7 = int_to_ptr.vmem [resolvable:$false] %s775_s7 }
 0x224   : > { %s777_s8 = scalar_lea.vmem %s776_s7, 64  ;;  %p778_p4 = scmp.lt.s32.totalorder %s506_s4, %s776_s7 }
 0x225   : > { %p773_p10 = pnand %p772_p9, %p628_p8  ;;  %p779_p2 = scmp.lt.s32.totalorder %s777_s8, %s771_s5 }
 0x227   : > { %p774_p1 = pneg %p773_p10  ;;  %p780_p0 = por %p779_p2, %p778_p4 }
 0x229   : > { %p781_p3 = pnand %p780_p0, %p774_p1 }
 0x22b   : > { %784 = shalt.err (!%p781_p3)
}
 0x22c   : > { %s785_s16 = scalar_lea.hbm %s503_s30, %s1031_s26  ;;  %s789_s11 = scalar_lea.hbm %s1079_s3, 48 }
 0x22d   : > { %p786_p7 = scmp.ne.s32.totalorder %s503_s30, %s785_s16  ;;  %p790_p11 = scmp.lt.s32.totalorder %s503_s30, %s1079_s3 }
 0x22e   : > { %p791_p13 = scmp.lt.s32.totalorder %s789_s11, %s785_s16 }
 0x22f   : > { %p787_p12 = pnand %p786_p7, %p628_p8 }
 0x230   : > { %p792_p5 = por %p791_p13, %p790_p11 }
 0x231   : > { %p788_p6 = pneg %p787_p12 }
 0x233   : > { %p793_p9 = pnand %p792_p5, %p788_p6 }
 0x235   : > { %796 = shalt.err (!%p793_p9)
}
 0x236   : > { %508 = dma.vmem_to_hbm [thread:$0]  (%p628_p8), %s506_s4, %s1031_s26, %s503_s30, %s486_s20  }
 0x237 PF: > { %s517_s22 = sand.u32 1, %s831_s12   ;;  %p1095_p10 = scmp.ne.s32.totalorder %s1086_s25, 0 }
 0x238   : > { %p1096_p1 = scmp.ge.s32.totalorder %s843_s15, 2  ;;  %s518_s27 = scalar_lea.sflag [#allocation4], %s517_s22 }
 0x23a   : > { %p652_p4 = pnand %p1096_p1, %p1095_p10 }
 0x23c   : > { %p653_p2 = pneg %p652_p4 }
 0x23e   : > { %826 = dma.done.wait (%p653_p2), %s518_s27, 32  }
 0x23f   : > { %828 = vsyncadd (%p653_p2), %s518_s27, 4294967264  ;;  %p18_p0 = scmp.ge.s32.totalorder %s900_s18, 4   ;;  %s1097_s12 = smov %s835_s13 }
 0x240   : > { %s1098_s13 = smov %s839_s14  ;;  %s1099_s14 = smov %s912_s21 }
 0x241   : > { %s1100_s15 = smov %s900_s18  ;;  %20 = sbr.rel (!%p18_p0) target bundleno = 7 (0x7), region = 87 }
 0x246   :  { %523 = vsyncpa [#allocation3], 1 }
 0x247   :  { %525 = vsyncpa [#allocation3 + $0x1], 1 }
 0x248   :  { %526 = vsyncpa [#allocation8], 1 }
 0x249   :  { %528 = vsyncpa [#allocation8 + $0x1], 1 }
 0x24a   :  { %529 = vsyncpa [#allocation4], 1 }
 0x24b   :  { %531 = vsyncpa [#allocation4 + $0x1], 1 }
 0x24c   :  { %532 = vsyncpa [#allocation5], 1 }
 0x24d   :  { %534 = vsyncpa [#allocation5 + $0x1], 1 }

</bundles_post_ra>
